<compile_context>
chip_gen: v6e
topology: v6e:2x2x1
jax: 0.10.0
libtpu: 0.0.40
codegen_flags: <defaults>
</compile_context>

<pallas_src>
import functools

import jax
import jax.numpy as jnp
from jax.experimental import pallas as pl
from jax.experimental.pallas import tpu as pltpu


def _se_atn_kernel(inv_hw, x_ref, w1t_ref, w2t_ref, out_ref, acc_ref):
    """Streaming global-average-pool + SE head.

    x_ref:   (bt, C, hw_tile)  lane-dense input tile
    w1t_ref: (C, Cr)  weight of Linear(C, Cr), transposed (f32)
    w2t_ref: (Cr, C)  weight of Linear(Cr, C), transposed (f32)
    out_ref: (bt, 1, C)  sigmoid attention weights
    acc_ref: (bt, C)  f32 running spatial sum (VMEM scratch)
    """
    j = pl.program_id(1)

    @pl.when(j == 0)
    def _init():
        acc_ref[...] = jnp.zeros_like(acc_ref)

    # Partial spatial sum for this lane-dense tile (accumulate in f32).
    acc_ref[...] += jnp.sum(x_ref[...].astype(jnp.float32), axis=-1)

    @pl.when(j == pl.num_programs(1) - 1)
    def _finalize():
        mean = acc_ref[...] * inv_hw                                  # (bt, C)
        # Vectorized SE head: two tiny MXU matmuls, one unmasked store.
        h = jnp.dot(mean, w1t_ref[...],
                    preferred_element_type=jnp.float32)               # (bt, Cr)
        h = jnp.maximum(h, 0.0)                                       # ReLU
        y = jnp.dot(h, w2t_ref[...],
                    preferred_element_type=jnp.float32)               # (bt, C)
        out_ref[:, 0, :] = (1.0 / (1.0 + jnp.exp(-y))).astype(out_ref.dtype)


# Per-pipeline-buffer budget for the streamed x block.  >=512-lane tiles
# already sit at ~85% of HBM roofline, so 4 MiB/buffer loses nothing while
# staying comfortably inside v7x's 64 MiB physical VMEM (and the 16/32 MiB
# scoped defaults on v5e/v6e once vmem_limit_bytes is raised accordingly).
_X_BUFFER_BYTES = 4 * 1024 * 1024


def _pick_bt(b, c, itemsize, budget):
    """Batch tile: divisor of b, <= 8, preferring >= 2 batch blocks (v7x
    megacore) and keeping even a minimal 128-lane x block within budget."""
    cap = min(8, b // 2) if b >= 2 else 1
    cap = max(cap, 1)
    bt = 1
    for t in range(cap, 0, -1):
        if b % t == 0:
            bt = t
            break
    # Shrink bt (to smaller divisors of b) if C is so large that even a
    # 128-lane tile would not fit the per-buffer budget.
    while bt > 1 and bt * c * 128 * itemsize > budget:
        nt = bt - 1
        while nt > 1 and b % nt != 0:
            nt -= 1
        bt = nt
    return bt


def _pick_hw_tile(hw_pad, bt, c, itemsize, budget):
    """Largest multiple of 128 dividing hw_pad whose x block fits the budget."""
    if hw_pad % 128 != 0:
        # Only happens for hw < 128: keep the full extent (legal block).
        return hw_pad
    max_lanes = max(128, (budget // (bt * c * itemsize)) // 128 * 128)
    if hw_pad <= max_lanes:
        return hw_pad
    t = min(max_lanes, hw_pad)
    t -= t % 128
    while t >= 128:
        if hw_pad % t == 0:
            return t
        t -= 128
    return 128


def _x_block_spec(bt, c, hw_tile, n_hw):
    """BlockSpec for the streamed x input; triple-buffer small tiles."""
    idx = lambda i, j: (i, 0, j)
    shape = (bt, c, hw_tile)
    if hw_tile <= 256 and n_hw >= 3 and hasattr(pl, "Buffered"):
        try:
            return pl.BlockSpec(shape, idx, pipeline_mode=pl.Buffered(3)), 3
        except TypeError:
            pass
    return pl.BlockSpec(shape, idx), 2


def se_atn(x, w1, w2):
    """JAX/Pallas equivalent of SEAtn.forward.

    x:  (B, C, H, W)
    w1: (C // r, C)  weight of nn.Linear(C, C // r, bias=False)
    w2: (C, C // r)  weight of nn.Linear(C // r, C, bias=False)
    Returns (B, C, 1, 1) sigmoid attention weights in x.dtype.
    """
    b, c, h, w = x.shape
    cr = w1.shape[0]
    assert cr >= 1 and w1.shape == (cr, c) and w2.shape == (c, cr)

    hw = h * w
    itemsize = jnp.dtype(x.dtype).itemsize

    bt = _pick_bt(b, c, itemsize, _X_BUFFER_BYTES)
    n_b = b // bt

    # Lane-dense flatten; zero-pad the spatial axis to a multiple of 128 so
    # the reduction stays 128-lane tiled.  Exact: the mean uses the true H*W.
    x_f = x.reshape(b, c, hw)
    if hw >= 128 and hw % 128 != 0:
        hw_pad = ((hw + 127) // 128) * 128
        x_f = jnp.pad(x_f, ((0, 0), (0, 0), (0, hw_pad - hw)))
    else:
        hw_pad = hw

    hw_tile = _pick_hw_tile(hw_pad, bt, c, itemsize, _X_BUFFER_BYTES)
    n_hw = hw_pad // hw_tile

    # Pre-transpose weights so both head matmuls are plain (m,k)@(k,n).
    w1t = jnp.transpose(w1).astype(jnp.float32)   # (C, Cr)
    w2t = jnp.transpose(w2).astype(jnp.float32)   # (Cr, C)

    x_spec, n_x_buf = _x_block_spec(bt, c, hw_tile, n_hw)

    kernel = functools.partial(_se_atn_kernel, float(1.0 / hw))

    # VMEM limit derived from the actual pipelined buffer bytes (+ headroom),
    # capped below v7x's 64 MiB physical VMEM.
    x_block_bytes = bt * c * hw_tile * itemsize
    w_bytes = 2 * c * cr * 4
    vmem_limit = int(min(
        64 * 1024 * 1024,
        max(16 * 1024 * 1024,
            n_x_buf * x_block_bytes          # pipelined x buffers
            + 2 * w_bytes                    # double-buffered weights
            + 2 * bt * c * itemsize          # double-buffered output block
            + bt * c * 4                     # f32 accumulator scratch
            + 4 * 1024 * 1024)))             # compiler-internal headroom

    cost = pl.CostEstimate(
        flops=int(b * c * hw_pad + 4 * b * c * cr),
        transcendentals=int(b * c),
        bytes_accessed=int(b * c * hw_pad * itemsize + 2 * w_bytes
                           + b * c * itemsize),
    )

    out = pl.pallas_call(
        kernel,
        out_shape=jax.ShapeDtypeStruct((b, 1, c), x.dtype),
        grid_spec=pltpu.PrefetchScalarGridSpec(
            num_scalar_prefetch=0,
            grid=(n_b, n_hw),
            in_specs=[
                x_spec,
                pl.BlockSpec((c, cr), lambda i, j: (0, 0)),
                pl.BlockSpec((cr, c), lambda i, j: (0, 0)),
            ],
            out_specs=pl.BlockSpec((bt, 1, c), lambda i, j: (i, 0, 0)),
            scratch_shapes=[pltpu.VMEM((bt, c), jnp.float32)],
        ),
        compiler_params=pltpu.CompilerParams(
            dimension_semantics=("parallel", "arbitrary"),
            vmem_limit_bytes=vmem_limit,
        ),
        cost_estimate=cost,
    )(x_f, w1t, w2t)

    return out.reshape(b, c, 1, 1)


if __name__ == "__main__":
    key = jax.random.PRNGKey(0)
    kx, k1, k2 = jax.random.split(key, 3)

    # Small shapes consistent with SEAtn: batch=2, channel=32, 16x16 spatial,
    # reduction=16 -> hidden (C // r) = 2.
    B, C, H, W = 2, 32, 16, 16
    R = 16
    CR = C // R

    x = jax.random.normal(kx, (B, C, H, W), dtype=jnp.float32)
    # Bias-free Linear weights (PyTorch layouts).
    w1 = jax.random.normal(k1, (CR, C), dtype=jnp.float32) / jnp.sqrt(C)
    w2 = jax.random.normal(k2, (C, CR), dtype=jnp.float32) / jnp.sqrt(CR)

    out = se_atn(x, w1, w2)
    jax.block_until_ready(out)

    # Plain-JAX reference.
    y = jnp.mean(x, axis=(2, 3))                       # (B, C)
    h1 = jnp.maximum(y @ w1.T, 0.0)
    ref = jax.nn.sigmoid(h1 @ w2.T).reshape(B, C, 1, 1)

    assert out.shape == (B, C, 1, 1)
    assert jnp.allclose(out, ref, atol=1e-5, rtol=1e-5), "mismatch vs reference"

    print("KERNEL_OK")
</pallas_src>

<mosaic_0001>
module attributes {stable_mosaic.version = 11 : i64} {
  func.func @_se_atn_kernel(%arg0: i32, %arg1: i32, %arg2: memref<1x32x256xf32, #tpu.memory_space<vmem>>, %arg3: memref<32x2xf32, #tpu.memory_space<vmem>>, %arg4: memref<2x32xf32, #tpu.memory_space<vmem>>, %arg5: memref<1x1x32xf32, #tpu.memory_space<vmem>>, %arg6: memref<1x32xf32, #tpu.memory_space<vmem>>) attributes {dimension_semantics = [#tpu.dimension_semantics<parallel>, #tpu.dimension_semantics<arbitrary>], iteration_bounds = array<i64: 2, 1>, scalar_prefetch = 0 : i64, scratch_operands = 1 : i64, tpu.core_type = #tpu.core_type<tc>, window_params = [{transform_indices = @transform_0, window_bounds = array<i64: 1, 32, 256>}, {pipeline_mode = #tpu.pipeline_mode<synchronous>, transform_indices = @transform_1, window_bounds = array<i64: 32, 2>}, {pipeline_mode = #tpu.pipeline_mode<synchronous>, transform_indices = @transform_2, window_bounds = array<i64: 2, 32>}, {transform_indices = @transform_3, window_bounds = array<i64: 1, 1, 32>}]} {
    %c0_i32 = arith.constant 0 : i32
    %0 = arith.cmpi eq, %arg1, %c0_i32 : i32
    %1 = arith.extui %0 : i1 to i32
    %c0_i32_0 = arith.constant 0 : i32
    %2 = arith.cmpi ne, %1, %c0_i32_0 : i32
    scf.if %2 {
      %cst_9 = arith.constant 0.000000e+00 : f32
      %11 = vector.broadcast %cst_9 : f32 to vector<1x32xf32>
      %c0_10 = arith.constant 0 : index
      %c0_11 = arith.constant 0 : index
      %12 = vector.load %arg6[%c0_10, %c0_11] : memref<1x32xf32, #tpu.memory_space<vmem>>, vector<1x32xf32>
      tpu.vector_store %arg6[%c0_10, %c0_11], %11 {strides = array<i32>} : memref<1x32xf32, #tpu.memory_space<vmem>>, vector<1x32xf32>,
    } else {
    }
    %c0 = arith.constant 0 : index
    %c0_1 = arith.constant 0 : index
    %3 = vector.load %arg6[%c0, %c0_1] : memref<1x32xf32, #tpu.memory_space<vmem>>, vector<1x32xf32>
    %c0_2 = arith.constant 0 : index
    %c0_3 = arith.constant 0 : index
    %c0_4 = arith.constant 0 : index
    %4 = vector.load %arg2[%c0_2, %c0_3, %c0_4] : memref<1x32x256xf32, #tpu.memory_space<vmem>>, vector<1x32x256xf32>
    %cst = arith.constant dense<0.000000e+00> : vector<1x32xf32>
    %5 = vector.multi_reduction <add>, %4, %cst [2] : vector<1x32x256xf32> to vector<1x32xf32>
    %6 = arith.addf %3, %5 : vector<1x32xf32>
    %c0_5 = arith.constant 0 : index
    %c0_6 = arith.constant 0 : index
    %7 = vector.load %arg6[%c0_5, %c0_6] : memref<1x32xf32, #tpu.memory_space<vmem>>, vector<1x32xf32>
    tpu.vector_store %arg6[%c0_5, %c0_6], %6 {strides = array<i32>} : memref<1x32xf32, #tpu.memory_space<vmem>>, vector<1x32xf32>,
    %c0_i32_7 = arith.constant 0 : i32
    %8 = arith.cmpi eq, %arg1, %c0_i32_7 : i32
    %9 = arith.extui %8 : i1 to i32
    %c0_i32_8 = arith.constant 0 : i32
    %10 = arith.cmpi ne, %9, %c0_i32_8 : i32
    scf.if %10 {
      %c0_9 = arith.constant 0 : index
      %c0_10 = arith.constant 0 : index
      %11 = vector.load %arg6[%c0_9, %c0_10] : memref<1x32xf32, #tpu.memory_space<vmem>>, vector<1x32xf32>
      %cst_11 = arith.constant 3.906250e-03 : f32
      %12 = vector.broadcast %cst_11 : f32 to vector<1x32xf32>
      %13 = arith.mulf %11, %12 : vector<1x32xf32>
      %c0_12 = arith.constant 0 : index
      %c0_13 = arith.constant 0 : index
      %14 = vector.load %arg3[%c0_12, %c0_13] : memref<32x2xf32, #tpu.memory_space<vmem>>, vector<32x2xf32>
      %cst_14 = arith.constant dense<0.000000e+00> : vector<1x2xf32>
      %15 = tpu.matmul %13, %14, %cst_14 {dimension_numbers = #tpu.dot_dimension_numbers<[1], [0], [0], [1], [0, 0, 1, 1], [], []>} : vector<1x32xf32>, vector<32x2xf32>, vector<1x2xf32> -> vector<1x2xf32>
      %cst_15 = arith.constant 0.000000e+00 : f32
      %16 = vector.broadcast %cst_15 : f32 to vector<1x2xf32>
      %17 = arith.maximumf %15, %16 : vector<1x2xf32>
      %c0_16 = arith.constant 0 : index
      %c0_17 = arith.constant 0 : index
      %18 = vector.load %arg4[%c0_16, %c0_17] : memref<2x32xf32, #tpu.memory_space<vmem>>, vector<2x32xf32>
      %cst_18 = arith.constant dense<0.000000e+00> : vector<1x32xf32>
      %19 = tpu.matmul %17, %18, %cst_18 {dimension_numbers = #tpu.dot_dimension_numbers<[1], [0], [0], [1], [0, 0, 1, 1], [], []>} : vector<1x2xf32>, vector<2x32xf32>, vector<1x32xf32> -> vector<1x32xf32>
      %cst_19 = arith.constant 0.000000e+00 : f32
      %20 = vector.broadcast %cst_19 : f32 to vector<1x32xf32>
      %21 = arith.subf %20, %19 : vector<1x32xf32>
      %22 = math.exp %21 : vector<1x32xf32>
      %cst_20 = arith.constant 1.000000e+00 : f32
      %23 = vector.broadcast %cst_20 : f32 to vector<1x32xf32>
      %24 = arith.addf %23, %22 : vector<1x32xf32>
      %cst_21 = arith.constant 1.000000e+00 : f32
      %25 = vector.broadcast %cst_21 : f32 to vector<1x32xf32>
      %26 = arith.divf %25, %24 : vector<1x32xf32>
      %c0_22 = arith.constant 0 : index
      %c0_23 = arith.constant 0 : index
      %c0_24 = arith.constant 0 : index
      %27 = vector.load %arg5[%c0_22, %c0_23, %c0_24] : memref<1x1x32xf32, #tpu.memory_space<vmem>>, vector<1x1x32xf32>
      %28 = vector.shape_cast %27 : vector<1x1x32xf32> to vector<1x32xf32>
      %29 = vector.shape_cast %26 : vector<1x32xf32> to vector<1x1x32xf32>
      tpu.vector_store %arg5[%c0_22, %c0_23, %c0_24], %29 {strides = array<i32>} : memref<1x1x32xf32, #tpu.memory_space<vmem>>, vector<1x1x32xf32>,
    } else {
    }
    return
  }
  func.func @transform_0(%arg0: i32, %arg1: i32) -> (i32, i32, i32) {
    %c0_i32 = arith.constant 0 : i32
    %c0_i32_0 = arith.constant 0 : i32
    return %arg0, %c0_i32, %arg1 : i32, i32, i32
  }
  func.func @transform_1(%arg0: i32, %arg1: i32) -> (i32, i32) {
    %c0_i32 = arith.constant 0 : i32
    %c0_i32_0 = arith.constant 0 : i32
    %c0_i32_1 = arith.constant 0 : i32
    return %c0_i32, %c0_i32_0 : i32, i32
  }
  func.func @transform_2(%arg0: i32, %arg1: i32) -> (i32, i32) {
    %c0_i32 = arith.constant 0 : i32
    %c0_i32_0 = arith.constant 0 : i32
    %c0_i32_1 = arith.constant 0 : i32
    return %c0_i32, %c0_i32_0 : i32, i32
  }
  func.func @transform_3(%arg0: i32, %arg1: i32) -> (i32, i32, i32) {
    %c0_i32 = arith.constant 0 : i32
    %c0_i32_0 = arith.constant 0 : i32
    %c0_i32_1 = arith.constant 0 : i32
    return %arg0, %c0_i32, %c0_i32_0 : i32, i32, i32
  }
}

</mosaic_0001>

<bundles_post_ra>
// kernel: tpu_custom_call.1
= control target key start
LH: loop header
LB: loop body
LE: loop exit
PB: predicated region body
PF: predicated region fallthrough
CT: control target
= control target key end

     0   :  { %8 = vsyncpa [#allocation4], 0  ;;  %s1378_s0 = inlined_call_operand.hbm [shape: f32[2,32,256], index: 0, kind: input, shape index: {}]   ;;  %s1379_s1 = inlined_call_operand.vmem [shape: f32[32,2], index: 1, kind: input, shape index: {}]   ;;  %s1380_s2 = inlined_call_operand.vmem [shape: f32[2,32], index: 2, kind: input, shape index: {}]   ;;  %s1381_s3 = inlined_call_operand.hbm [shape: f32[2,1,32], index: 3, kind: output, shape index: {}]  }
   0x1   :  { %10 = vsyncpa [#allocation4 + $0x1], 0 }
   0x2   :  { %11 = vsyncpa [#allocation5], 0 }
   0x3   :  { %13 = vsyncpa [#allocation5 + $0x1], 0  ;;  %s1128_s12 = smov 0   ;;  %s1130_s13 = smov 0  }
   0x4   :  { %s1132_s14 = smov 0   ;;  %s1134_s15 = smov 0  }
   0x5   :  { %s1136_s16 = smov 0   ;;  %s1138_s17 = smov 0  }
   0x6 LB: > { %s877_s18 = sadd.s32 4294967295, %s1098_s17   ;;  %s878_s19 = sadd.s32 4294967294, %s1098_s17   ;;  %s1098_s17 = sphi %s1138_s17, %s19_s17   ;;  %s1094_s16 = sphi %s1136_s16, %s1392_s16   ;;  %s1090_s15 = sphi %s1134_s15, %s1391_s15   ;;  %s1086_s14 = sphi %s1132_s14, %s1390_s14   ;;  %s1082_s13 = sphi %s1130_s13, %s1389_s13   ;;  %s1078_s12 = sphi %s1128_s12, %s1388_s12  }
   0x7   : > { %s31_s20 = sadd.s32 1, %s1094_s16  ;;  %s40_s21 = sadd.s32 1, %s1086_s14 }
   0x8   : > { %p33_p0 = scmp.ge.s32.totalorder %s31_s20, 2  ;;  %p47_p1 = scmp.ne.s32.totalorder %s1086_s14, %s1082_s13 }
   0x9   : > { %p48_p2 = scmp.eq.s32.totalorder %s1098_s17, 0  ;;  %p53_p3 = scmp.ne.s32.totalorder %s1082_s13, %s1078_s12 }
   0xa   : > { %s1394_s20 = smov (%p33_p0, %s31_s20), 0  ;;  %p54_p5 = scmp.eq.s32.totalorder %s877_s18, 0 }
   0xb   : > { %p1169_p4 = por %p48_p2, %p47_p1  ;;  %s35_s23 = ssub.s32 %s1094_s16, %s1394_s20 }
   0xc   : > { %p119_p6 = scmp.eq.s32.totalorder %s877_s18, 1  ;;  %p38_p7 = scmp.eq.s32.totalorder %s35_s23, 0 }
   0xd   : > { %p1175_p8 = por %p54_p5, %p53_p3  ;;  %p125_p10 = scmp.eq.s32.totalorder %s878_s19, 1 }
   0xe   : > { %p1179_p9 = por %p119_p6, %p47_p1  ;;  %p928_p13 = scmp.lt.s32.totalorder %s1098_s17, 2 }
   0xf   : > { %s1184_s26 = scalar_select %p38_p7, %s1086_s14, %s40_s21  }
  0x10   : > { %p1186_p11 = por %p125_p10, %p53_p3  ;;  %s151_s28 = sand.u32 1, %s1086_s14  }
  0x11   : > { %s881_s29 = sshll.u32 %s151_s28, 6  ;;  %s892_s30 = sshll.u32 %s1094_s16, 10 }
  0x12   : > { %s163_s6 = scalar_lea.hbm %s1378_s0, %s892_s30  ;;  %s155_s7 = scalar_lea.vmem [#allocation3], %s881_s29 }
  0x13   : > { %s164_s8 = sshll.u32 %s155_s7, 4  ;;  %p1199_p0 = pnand %p928_p13, %p1169_p4  ;;  %s165_s8 = int_to_ptr.vmem [resolvable:$true] %s164_s8 }
  0x14   : > { %p884_p1 = scmp.ge.s32.totalorder %s1098_s17, 1  ;;  %s152_s10 = scalar_lea.sflag [#allocation4], %s151_s28 }
  0x15   : > { %p992_p2 = pneg %p1199_p0  ;;  %s1003_s11 = scalar_lea.vmem %s165_s8, 1024 }
  0x16   : > { %p1004_p3 = scmp.ne.s32.totalorder %s165_s8, %s1003_s11  ;;  %s1100_s18 = smov [#allocation3]  }
  0x17   : > { %s1008_s19 = sshll.u32 %s1100_s18, 4  ;;  %s1009_s19 = int_to_ptr.vmem [resolvable:$false] %s1008_s19 }
  0x18   : > { %p1006_p5 = pnand %p1004_p3, %p992_p2  ;;  %s1010_s21 = scalar_lea.vmem %s1009_s19, 2048 }
  0x19   : > { %p1011_p7 = scmp.lt.s32.totalorder %s165_s8, %s1009_s19  ;;  %p1012_p10 = scmp.lt.s32.totalorder %s1010_s21, %s1003_s11 }
  0x1a   : > { %p1007_p6 = pneg %p1006_p5 }
  0x1b   : > { %p1013_p12 = por %p1012_p10, %p1011_p7 }
  0x1d   : > { %p1014_p4 = pnand %p1013_p12, %p1007_p6 }
  0x1f   : > { %1017 = shalt.err (!%p1014_p4)
}
  0x20   : > { %s1101_s22 = smov 256   ;;  %s1102_s23 = smov 16  }
  0x21   : > { %923 = dma.hbm_to_vmem [thread:$0]  (!%p1199_p0), %s163_s6, 1024, %s165_s8, %s152_s10, %s1101_s22, %s1101_s22, %s1102_s23  }
  0x22   : > { %p172_p13 = scmp.lt.s32.totalorder %s1098_s17, 3 }
  0x24   : > { %p173_p2 = pnand %p884_p1, %p172_p13 }
  0x25   : > { %s1212_s28 = sand.u32 (!%p173_p2), 1, %s1082_s13  }
  0x26   : > { %176 = sbr.rel (%p173_p2) target bundleno = 791 (0x317), region = 32  ;;  %s885_s29 = sshll.u32 (!%p173_p2), %s1212_s28, 6 }
  0x27   : > { %s179_s30 = scalar_lea.sflag (!%p173_p2), [#allocation4], %s1212_s28  ;;  %s182_s4 = scalar_lea.vmem (!%p173_p2), [#allocation3], %s885_s29 }
  0x2b   : > { %1069 = dma.done.wait (%p1175_p8), %s179_s30, 1024  }
  0x2c   : > { %1071 = vsyncadd (%p1175_p8), %s179_s30, 4294966272  ;;  %v212_v0 = vld [vmem:[%s182_s4] sm:$0xff]  ;;  %v213_v1 = vld [vmem:[%s182_s4 + $0x8] sm:$0xff]  ;;  %v1103_v12 = vmov 0   ;;  %v236_v13 = vlaneseq  ;;  %v1104_v14 = vmov 1966171168  }
  0x2d   : > { %v214_v2 = vld [vmem:[%s182_s4 + $0x10] sm:$0xff]  ;;  %v220_v3 = vadd.f32 %v213_v1, %v212_v0  ;;  %v215_v4 = vld [vmem:[%s182_s4 + $0x18] sm:$0xff]  ;;  %v216_v5 = vld [vmem:[%s182_s4 + $0x20] sm:$0xff]  ;;  %984 = vset.pattern.permute.xlu0 %v1103_v12  ;;  %985 = vset.pattern.permute.xlu1 %v1103_v12  ;;  %v369_v15 = vunpack.c.l.s4 %v1104_v14  ;;  %vm209_vm0 = vcmask 253952   ;;  %vm1106_vm1 = vmmov 0   ;;  %s889_s21 = sshll.u32 %s1090_s15, 4 }
  0x2e   : > { %v217_v6 = vld [vmem:[%s182_s4 + $0x28] sm:$0xff]  ;;  %v218_v8 = vld [vmem:[%s182_s4 + $0x30] sm:$0xff]  ;;  %v219_v9 = vld [vmem:[%s182_s4 + $0x38] sm:$0xff]  ;;  %v223_v10 = vadd.f32 %v215_v4, %v214_v2  ;;  %v1221_v16 = vshrl.u32 %v236_v13, 7  ;;  %vm583_vm2 = vcmask 130112   ;;  %vm590_vm3 = vcmask 195712   ;;  %s1335_s4 = scalar_lea.hbm %s1381_s3, %s889_s21 }
  0x2f   : > { %v226_v7 = vadd.f32 %v217_v6, %v216_v5  ;;  %221 = vadd.xlane.f32.xlu0 %v220_v3  ;;  %v229_v11 = vadd.f32 %v219_v9, %v218_v8  ;;  %v370_v17 = vunpack.c.0.s8 %v369_v15  ;;  %vm597_vm4 = vcmask 261312   ;;  %s203_s22 = scalar_lea.vmem [#allocation6], %s1212_s28  ;;  %s788_s24 = scalar_lea.sflag [#allocation5], %s1212_s28 }
  0x30   : > { %v1224_v18 = vsub.s32 0, %v1221_v16  ;;  %v1227_v19 = vsub.s32 1, %v1221_v16  ;;  %v1230_v20 = vsub.s32 2, %v1221_v16  ;;  %v1233_v21 = vsub.s32 3, %v1221_v16  ;;  %s800_s23 = sshll.u32 %s203_s22, 4  ;;  %s1107_s6 = smov [#allocation6]   ;;  %s801_s23 = int_to_ptr.vmem [resolvable:$true] %s800_s23 }
  0x31   : > { %227 = vadd.xlane.f32.xlu1 %v226_v7  ;;  %v1236_v22 = vsub.s32 4, %v1221_v16  ;;  %v1239_v23 = vsub.s32 5, %v1221_v16  ;;  %v1242_v24 = vsub.s32 6, %v1221_v16  ;;  %v1245_v25 = vsub.s32 7, %v1221_v16  ;;  %s1018_s5 = scalar_lea.vmem %s801_s23, 16  ;;  %s1022_s7 = sshll.u32 %s1107_s6, 4  ;;  %s1023_s7 = int_to_ptr.vmem [resolvable:$false] %s1022_s7 }
  0x32   : > { %v1248_v27 = vsub.s32 %v370_v17, %v1221_v16  ;;  %vm626_vm5 = vcmask 261120   ;;  %vm706_vm6 = vcmask 1041408   ;;  %vm702_vm7 = vcmask 15360   ;;  %p1019_p8 = scmp.ne.s32.totalorder %s801_s23, %s1018_s5  ;;  %s1024_s15 = scalar_lea.vmem %s1023_s7, 32 }
  0x33   : > { %224 = vadd.xlane.f32.xlu0 %v223_v10  ;;  %p1025_p1 = scmp.lt.s32.totalorder %s801_s23, %s1023_s7  ;;  %p1026_p3 = scmp.lt.s32.totalorder %s1024_s15, %s1018_s5 }
  0x34   : > { %p1020_p12 = pnand %p1019_p8, %p1179_p9 }
  0x35   : > { %230 = vadd.xlane.f32.xlu1 %v229_v11  ;;  %p1027_p5 = por %p1026_p3, %p1025_p1 }
  0x36   : > { %p1021_p0 = pneg %p1020_p12 }
  0x38   : > { %p1028_p6 = pnand %p1027_p5, %p1021_p0 }
  0xb8   : > { %v222_v26 = vpop.xlane.xlu0 %221 }
  0xb9   : > { %v239_v29 = vrot.slane %v222_v26, %v1224_v18  ;;  %v243_v30 = vrot.slane %v222_v26, %v1227_v19  ;;  %v247_v31 = vrot.slane %v222_v26, %v1230_v20  ;;  %v251_v32 = vrot.slane %v222_v26, %v1233_v21 }
  0xba   : > { %v228_v28 = vpop.xlane.xlu1 %227  ;;  %v255_v33 = vrot.slane %v222_v26, %v1236_v22  ;;  %v259_v34 = vrot.slane %v222_v26, %v1239_v23  ;;  %v263_v35 = vrot.slane %v222_v26, %v1242_v24  ;;  %v267_v36 = vrot.slane %v222_v26, %v1245_v25 }
  0xbb   : > { %v364_v37 = vcombine.low %v239_v29, %v243_v30  ;;  %v365_v38 = vcombine.low %v247_v31, %v251_v32  ;;  %v303_v39 = vrot.slane %v228_v28, %v1224_v18  ;;  %v307_v40 = vrot.slane %v228_v28, %v1227_v19 }
  0xbc   : > { %v225_v41 = vpop.xlane.xlu0 %224  ;;  %v366_v42 = vcombine.low %v255_v33, %v259_v34  ;;  %v367_v43 = vcombine.low %v263_v35, %v267_v36  ;;  %v311_v44 = vrot.slane %v228_v28, %v1230_v20  ;;  %v315_v45 = vrot.slane %v228_v28, %v1233_v21 }
  0xbd   : > { %v374_v46 = vrot.slane %v364_v37, %v1248_v27  ;;  %v381_v47 = vrot.slane %v365_v38, %v1248_v27  ;;  %v271_v48 = vrot.slane %v225_v41, %v1224_v18  ;;  %v275_v49 = vrot.slane %v225_v41, %v1227_v19 }
  0xbe   : > { %v388_v50 = vrot.slane %v366_v42, %v1248_v27  ;;  %v395_v51 = vrot.slane %v367_v43, %v1248_v27  ;;  %v279_v52 = vrot.slane %v225_v41, %v1230_v20  ;;  %v283_v53 = vrot.slane %v225_v41, %v1233_v21  ;;  %v231_v2 = vpop.xlane.xlu1 %230 }
  0xbf   : > { %v396_v54 = vcombine.low %v374_v46, %v381_v47  ;;  %v287_v55 = vrot.slane %v225_v41, %v1236_v22  ;;  %v291_v56 = vrot.slane %v225_v41, %v1239_v23  ;;  %v295_v57 = vrot.slane %v225_v41, %v1242_v24 }
  0xc0   : > { %v397_v58 = vcombine.low %v388_v50, %v395_v51  ;;  %v299_v59 = vrot.slane %v225_v41, %v1245_v25  ;;  %v413_v60 = vcombine.low %v271_v48, %v275_v49  ;;  %v414_v61 = vcombine.low %v279_v52, %v283_v53 }
  0xc1   : > { %v404_v62 = vrot.slane %v396_v54, %v1248_v27  ;;  %v415_v63 = vcombine.low %v287_v55, %v291_v56  ;;  %v319_v0 = vrot.slane %v228_v28, %v1236_v22  ;;  %v323_v1 = vrot.slane %v228_v28, %v1239_v23  ;;  %v625_v55 = vld [vmem:[%s1379_s1 + $0x18] sm:$0xff]  ;;  %v624_v56 = vld [vmem:[%s1379_s1 + $0x10] sm:$0xff] }
  0xc2   : > { %v411_v3 = vrot.slane %v397_v58, %v1248_v27  ;;  %v416_v4 = vcombine.low %v295_v57, %v299_v59  ;;  %v423_v5 = vrot.slane %v413_v60, %v1248_v27  ;;  %v430_v6 = vrot.slane %v414_v61, %v1248_v27  ;;  %v623_v57 = vld [vmem:[%s1379_s1 + $0x8] sm:$0xff]  ;;  %v622_v58 = vld [vmem:[%s1379_s1] sm:$0xff] }
  0xc3   : > { %v437_v7 = vrot.slane %v415_v63, %v1248_v27  ;;  %v327_v8 = vrot.slane %v228_v28, %v1242_v24  ;;  %v331_v9 = vrot.slane %v228_v28, %v1245_v25  ;;  %v462_v10 = vcombine.low %v303_v39, %v307_v40 }
  0xc4   : > { %v412_v11 = vcombine.low %v404_v62, %v411_v3  ;;  %v444_v12 = vrot.slane %v416_v4, %v1248_v27  ;;  %v445_v14 = vcombine.low %v423_v5, %v430_v6  ;;  %v463_v15 = vcombine.low %v311_v44, %v315_v45 }
  0xc5   : > { %v464_v17 = vcombine.low %v319_v0, %v323_v1  ;;  %v465_v26 = vcombine.low %v327_v8, %v331_v9  ;;  %v472_v29 = vrot.slane %v462_v10, %v1248_v27  ;;  %v335_v30 = vrot.slane %v231_v2, %v1224_v18 }
  0xc6   : > { %561 = vperm.xlu0 %984, %v412_v11   ;;  %v446_v31 = vcombine.low %v437_v7, %v444_v12  ;;  %v453_v32 = vrot.slane %v445_v14, %v1248_v27  ;;  %v479_v33 = vrot.slane %v463_v15, %v1248_v27  ;;  %v339_v28 = vrot.slane %v231_v2, %v1227_v19 }
  0xc7   : > { %v486_v34 = vrot.slane %v464_v17, %v1248_v27  ;;  %v493_v35 = vrot.slane %v465_v26, %v1248_v27  ;;  %v343_v36 = vrot.slane %v231_v2, %v1230_v20  ;;  %v347_v37 = vrot.slane %v231_v2, %v1233_v21 }
  0xc8   : > { %v460_v38 = vrot.slane %v446_v31, %v1248_v27  ;;  %v494_v39 = vcombine.low %v472_v29, %v479_v33  ;;  %v351_v18 = vrot.slane %v231_v2, %v1236_v22  ;;  %v355_v40 = vrot.slane %v231_v2, %v1239_v23 }
  0xc9   : > { %v495_v41 = vcombine.low %v486_v34, %v493_v35  ;;  %v359_v42 = vrot.slane %v231_v2, %v1242_v24  ;;  %v363_v19 = vrot.slane %v231_v2, %v1245_v25  ;;  %v511_v43 = vcombine.low %v335_v30, %v339_v28  ;;  %v701_v30 = vld [vmem:[%s1380_s2] sm:$0x3] }
  0xca   : > { %v461_v44 = vcombine.low %v453_v32, %v460_v38  ;;  %v502_v45 = vrot.slane %v494_v39, %v1248_v27  ;;  %v512_v46 = vcombine.low %v343_v36, %v347_v37  ;;  %v513_v20 = vcombine.low %v351_v18, %v355_v40 }
  0xcb   : > { %v509_v21 = vrot.slane %v495_v41, %v1248_v27  ;;  %v514_v47 = vcombine.low %v359_v42, %v363_v19  ;;  %v521_v48 = vrot.slane %v511_v43, %v1248_v27  ;;  %v1105_v51 = vmov 0.0  }
  0xcc   : > { %564 = vperm.xlu1 %985, %v461_v44   ;;  %v528_v22 = vrot.slane %v512_v46, %v1248_v27  ;;  %v535_v23 = vrot.slane %v513_v20, %v1248_v27  ;;  %210 = vst.msk [vmem:[#allocation2] sm:$0x1] %vm209_vm0, %v1105_v51  ;;  %900 = vmatprep.subr.mxu0 %v1105_v51  ;;  %v573_v59 = vand.u32 127, %v236_v13 }
  0xcd   : > { %v510_v49 = vcombine.low %v502_v45, %v509_v21  ;;  %v542_v24 = vrot.slane %v514_v47, %v1248_v27  ;;  %911 = vmatprep.subr.mxu1 %v1105_v51  ;;  %901 = vmatpush3.msra.mxu0 %v625_v55 }
  0xce   : > { %v543_v25 = vcombine.low %v521_v48, %v528_v22  ;;  %908 = vmatprep.mubr.msk.f32.mxu0 %vm1106_vm1, %v1105_v51  ;;  %902 = vmatprep.subr.mxu0 %v1105_v51  ;;  %v578_v60 = vadd.s32 4294967288, %v573_v59  ;;  %v585_v61 = vadd.s32 4294967280, %v573_v59  ;;  %v592_v0 = vadd.s32 4294967272, %v573_v59 }
  0xcf   : > { %v544_v50 = vcombine.low %v535_v23, %v542_v24  ;;  %913 = vmatprep.mubr.msk.f32.mxu1 %vm1106_vm1, %v1105_v51  ;;  %903 = vmatpush3.msra.mxu0 %v624_v56  ;;  %v576_v2 = vsub.s32 %v573_v59, %v1221_v16 }
  0xd0   : > { %567 = vperm.xlu1 %985, %v510_v49   ;;  %v551_v52 = vrot.slane %v543_v25, %v1248_v27  ;;  %904 = vmatprep.subr.mxu0 %v1105_v51  ;;  %v581_v63 = vsub.s32 %v578_v60, %v1221_v16  ;;  %v588_v1 = vsub.s32 %v585_v61, %v1221_v16 }
  0xd1   : > { %v558_v53 = vrot.slane %v544_v50, %v1248_v27  ;;  %905 = vmatpush3.msra.mxu0 %v623_v57  ;;  %v595_v6 = vsub.s32 %v592_v0, %v1221_v16  ;;  %912 = vmatpush3.msk.msra.mxu1 %vm706_vm6, %v701_v30 }
  0xd2   : > { %906 = vmatprep.subr.mxu0 %v1105_v51 }
  0xd3   : > { %v559_v54 = vcombine.low %v551_v52, %v558_v53  ;;  %907 = vmatpush3.msra.mxu0 %v622_v58  ;;  %v211_v15 = vld [vmem:[#allocation2] sm:$0x1] }
  0xd5   : > { %570 = vperm.xlu1 %985, %v559_v54  }
 0x141   : > { %v562_v4 = vpop.permute.xlu0 %561 }
 0x142   : > { %v577_v8 = vrot.slane %v562_v4, %v576_v2 }
 0x147   : > { %v565_v62 = vpop.permute.xlu1 %564 }
 0x148   : > { %v582_v5 = vrot.slane %v565_v62, %v581_v63 }
 0x14a   : > { %v584_v9 = vsel %vm583_vm2, %v582_v5, %v577_v8 }
 0x14b   : > { %v568_v3 = vpop.permute.xlu1 %567 }
 0x14c   : > { %v589_v7 = vrot.slane %v568_v3, %v588_v1 }
 0x14e   : > { %v591_v11 = vsel %vm590_vm3, %v589_v7, %v584_v9 }
 0x150   : > { %v571_v13 = vpop.permute.xlu1 %570 }
 0x151   : > { %v596_v10 = vrot.slane %v571_v13, %v595_v6 }
 0x153   : > { %v598_v12 = vsel %vm597_vm4, %v596_v10, %v591_v11 }
 0x154   : > { %v605_v14 = vrot.slane %v598_v12, %v1248_v27 }
 0x156   : > { %v612_v17 = vrot.slane %v605_v14, %v1248_v27 }
 0x158   : > { %v614_v26 = vadd.f32 %v612_v17, %v211_v15 }
 0x15a   : > { %616 = vst.msk [vmem:[#allocation2] sm:$0x1] %vm209_vm0, %v614_v26 }
 0x161   : > { %v620_v29 = vld [vmem:[#allocation2] sm:$0x1] }
 0x162   : > { %v621_v16 = vmul.f32 0.00390625, %v620_v29 }
 0x164   : > { %909 = vmatmul.mubr.msk.f32.vlgmr.msra.gmra.mxu0 %vm626_vm5, %v621_v16 }
 0x224   : > { %v696_v31 = vpop.f32.mrf.mxu0 }
 0x225   : > { %v700_v32 = vmax.f32 %v696_v31, 0.0 }
 0x226   : > { %v910_v33 = vpop.f32.mrf.mxu0 }
 0x227   : > { %914 = vmatmul.mubr.msk.f32.vlgmr.msra.gmra.mxu1 %vm702_vm7, %v700_v32 }
 0x2e7   : > { %v776_v27 = vpop.f32.mrf.mxu1 }
 0x2e8   : > { %v780_v28 = vsub.f32 0.0, %v776_v27 }
 0x2e9   : > { %v915_v34 = vpop.f32.mrf.mxu1 }
 0x2ea   : > { %v781_v35 = vmul.f32 1.442695, %v780_v28 }
 0x2ec   : > { %986 = vpow2.f32 %v781_v35 }
 0x2f9   : > { %v987_v36 = vpop.eup %986 }
 0x2fa   : > { %v783_v37 = vadd.f32 1.0, %v987_v36 }
 0x2fc   : > { %988 = vrcp.f32 %v783_v37 }
 0x309   : > { %v989_v38 = vpop.eup %988 }
 0x30a   : > { %786 = vst.msk [vmem:[%s203_s22] sm:$0x1] %vm209_vm0, %v989_v38 }
 0x30b   : > { %1031 = shalt.err (!%p1028_p6)
}
 0x30c   : > { %s1032_s8 = scalar_lea.hbm %s1335_s4, 16  ;;  %s1036_s10 = scalar_lea.hbm %s1381_s3, 32 }
 0x30d   : > { %p1033_p7 = scmp.ne.s32.totalorder %s1335_s4, %s1032_s8  ;;  %p1037_p13 = scmp.lt.s32.totalorder %s1335_s4, %s1381_s3 }
 0x30e   : > { %p1038_p2 = scmp.lt.s32.totalorder %s1036_s10, %s1032_s8 }
 0x30f   : > { %p1034_p10 = pnand %p1033_p7, %p1179_p9 }
 0x310   : > { %p1039_p8 = por %p1038_p2, %p1037_p13 }
 0x311   : > { %p1035_p4 = pneg %p1034_p10 }
 0x313   : > { %p1040_p12 = pnand %p1039_p8, %p1035_p4 }
 0x315   : > { %1043 = shalt.err (!%p1040_p12)
}
 0x316   : > { %918 = dma.vmem_to_hbm [thread:$0]  (%p1179_p9), %s801_s23, 16, %s1335_s4, %s788_s24  }
 0x317 PF: > { %s812_s19 = sand.u32 1, %s1078_s12   ;;  %p1387_p0 = scmp.ge.s32.totalorder %s1098_s17, 2 }
 0x318   : > { %s813_s21 = scalar_lea.sflag [#allocation5], %s812_s19 }
 0x319   : > { %p925_p1 = pnand %p1387_p0, %p1186_p11 }
 0x31b   : > { %p926_p3 = pneg %p925_p1 }
 0x31d   : > { %1073 = dma.done.wait (%p926_p3), %s813_s21, 16  }
 0x31e   : > { %1075 = vsyncadd (%p926_p3), %s813_s21, 4294967280  ;;  %s19_s17 = sadd.s32 1, %s1098_s17   ;;  %s1388_s12 = smov %s1082_s13 }
 0x31f   : > { %p16_p5 = scmp.ge.s32.totalorder %s19_s17, 4   ;;  %s1389_s13 = smov %s1086_s14 }
 0x320   : > { %s1390_s14 = smov %s1184_s26  ;;  %s1391_s15 = smov %s1094_s16 }
 0x321   : > { %s1392_s16 = smov %s1394_s20  ;;  %18 = sbr.rel (!%p16_p5) target bundleno = 6 (0x6), region = 85 }
 0x326   :  { %817 = vsyncpa [#allocation4], 1 }
 0x327   :  { %819 = vsyncpa [#allocation4 + $0x1], 1 }
 0x328   :  { %820 = vsyncpa [#allocation5], 1 }
 0x329   :  { %822 = vsyncpa [#allocation5 + $0x1], 1 }

</bundles_post_ra>
